<compile_context>
chip_gen: v7x
topology: tpu7x:2x2x1
jax: 0.10.0
libtpu: 0.0.40
codegen_flags: <defaults>
</compile_context>

<pallas_src>
import jax
import jax.numpy as jnp
from jax.experimental import pallas as pl
from jax.experimental.pallas import tpu as pltpu


def _decoder_block_kernel(x_ref, w0_ref, b0_ref, w1_ref, b1_ref, o_ref,
                          xbuf_ref, mbuf_ref):
    # x_ref  : (1, H, W*C) f32   lane-dense input slab (one batch element)
    # w*_ref : (3, W*C, W*C) bf16 banded block-Toeplitz conv weights (per kh)
    # b*_ref : (1, W*C) f32       channel bias tiled W times
    # o_ref  : (1, H, W*C) f32
    # *buf_ref: (H+2, W*C) f32 VMEM scratch; only rows 0 / H+1 are the zero halo
    H, WC = x_ref.shape[1], x_ref.shape[2]
    Hp = H + 2

    x2 = x_ref[0]                                     # (H, WC) f32
    zrow = jnp.zeros((1, WC), dtype=jnp.float32)

    # ---- conv0 + bias + ReLU ----
    # H-halo scratch: zero only the two border rows, interior always rewritten.
    xbuf_ref[0:1, :] = zrow
    xbuf_ref[Hp - 1:Hp, :] = zrow
    xbuf_ref[1:1 + H, :] = x2

    acc0 = jnp.zeros((H, WC), jnp.float32)
    for kh in range(3):
        acc0 += jnp.dot(xbuf_ref[kh:kh + H, :].astype(jnp.bfloat16),
                        w0_ref[kh],
                        preferred_element_type=jnp.float32)
    y = jnp.maximum(acc0 + b0_ref[...], 0.0)          # f32 bias + ReLU

    # ---- conv1 + bias ----
    mbuf_ref[0:1, :] = zrow
    mbuf_ref[Hp - 1:Hp, :] = zrow
    mbuf_ref[1:1 + H, :] = y

    acc1 = jnp.zeros((H, WC), jnp.float32)
    for kh in range(3):
        acc1 += jnp.dot(mbuf_ref[kh:kh + H, :].astype(jnp.bfloat16),
                        w1_ref[kh],
                        preferred_element_type=jnp.float32)

    # ---- bias + residual add, lane-dense store ----
    o_ref[0] = (acc1 + b1_ref[...] + x2).astype(o_ref.dtype)


def _band_weights(w, W):
    """PyTorch OIHW (Cout, Cin, 3, 3) -> (3, W*Cin, W*Cout) bf16 banded weight.

    A[kh, w_in*Cin + ci, w_out*Cout + co] = w[co, ci, kh, kw] with
    kw = w_in - w_out + 1 (0..2), zero outside the band (this also implements
    the W-direction zero padding of the 'same' conv).
    """
    Cout, Cin, KH, KW = w.shape
    tap = jnp.transpose(w, (2, 3, 1, 0))              # (kh, kw, ci, co)
    wi = jnp.arange(W)                                # input pixel index
    wo = jnp.arange(W)                                # output pixel index
    kw_idx = wi[:, None] - wo[None, :] + 1            # (W_in, W_out)
    valid = (kw_idx >= 0) & (kw_idx <= KW - 1)
    kw_c = jnp.clip(kw_idx, 0, KW - 1)
    A = tap[:, kw_c]                                  # (3, W_in, W_out, Cin, Cout)
    A = A * valid[None, :, :, None, None].astype(w.dtype)
    A = jnp.transpose(A, (0, 1, 3, 2, 4))             # (3, W_in, Cin, W_out, Cout)
    A = A.reshape(KH, W * Cin, W * Cout)
    return A.astype(jnp.bfloat16)


def decoder_block(x_nchw, w0, b0, w1, b1):
    """x_nchw: (N, C, H, W) f32. w: (Cout, Cin, 3, 3) PyTorch layout, Cin==Cout."""
    N, C, H, W = x_nchw.shape
    assert w0.shape == (C, C, 3, 3) and w1.shape == (C, C, 3, 3)
    WC = W * C
    Hp = H + 2

    # NCHW -> NHWC -> lane-dense (N, H, W*C).  No spatial pad here: the H halo
    # is handled by the in-kernel scratch, the W halo by the banded weights.
    x2d = jnp.transpose(x_nchw, (0, 2, 3, 1)).reshape(N, H, WC)

    w0b = _band_weights(w0, W)                        # (3, WC, WC) bf16
    w1b = _band_weights(w1, W)
    b0t = jnp.tile(b0, W).reshape(1, WC).astype(jnp.float32)
    b1t = jnp.tile(b1, W).reshape(1, WC).astype(jnp.float32)

    out2d = pl.pallas_call(
        _decoder_block_kernel,
        out_shape=jax.ShapeDtypeStruct((N, H, WC), x2d.dtype),
        grid_spec=pltpu.PrefetchScalarGridSpec(
            num_scalar_prefetch=0,
            grid=(N,),
            in_specs=[
                pl.BlockSpec((1, H, WC), lambda n: (n, 0, 0)),
                pl.BlockSpec((3, WC, WC), lambda n: (0, 0, 0)),
                pl.BlockSpec((1, WC), lambda n: (0, 0)),
                pl.BlockSpec((3, WC, WC), lambda n: (0, 0, 0)),
                pl.BlockSpec((1, WC), lambda n: (0, 0)),
            ],
            out_specs=pl.BlockSpec((1, H, WC), lambda n: (n, 0, 0)),
            scratch_shapes=[pltpu.VMEM((Hp, WC), jnp.float32),
                            pltpu.VMEM((Hp, WC), jnp.float32)],
        ),
        compiler_params=pltpu.CompilerParams(
            dimension_semantics=("parallel",),
            vmem_limit_bytes=32 * 1024 * 1024),
    )(x2d, w0b, b0t, w1b, b1t)

    # (N, H, W*C) -> (N, H, W, C) is a free reshape; transpose back to NCHW.
    out = out2d.reshape(N, H, W, C)
    return jnp.transpose(out, (0, 3, 1, 2))


def _reference(x_nchw, w0, b0, w1, b1):
    """Pure-JAX f32 reference (mirrors the PyTorch forward)."""
    dn = jax.lax.conv_dimension_numbers(x_nchw.shape, w0.shape,
                                        ("NCHW", "OIHW", "NCHW"))
    y = jax.lax.conv_general_dilated(x_nchw, w0, (1, 1), "SAME",
                                     dimension_numbers=dn)
    y = y + b0[None, :, None, None]
    y = jnp.maximum(y, 0.0)
    z = jax.lax.conv_general_dilated(y, w1, (1, 1), "SAME",
                                     dimension_numbers=dn)
    z = z + b1[None, :, None, None]
    return z + x_nchw


if __name__ == "__main__":
    key = jax.random.PRNGKey(0)
    N, C, H, W = 2, 8, 16, 16  # in_channels == out_channels (residual add)

    k_x, k_w0, k_b0, k_w1, k_b1 = jax.random.split(key, 5)
    x = jax.random.normal(k_x, (N, C, H, W), dtype=jnp.float32)
    w0 = 0.1 * jax.random.normal(k_w0, (C, C, 3, 3), dtype=jnp.float32)
    b0 = 0.1 * jax.random.normal(k_b0, (C,), dtype=jnp.float32)
    w1 = 0.1 * jax.random.normal(k_w1, (C, C, 3, 3), dtype=jnp.float32)
    b1 = 0.1 * jax.random.normal(k_b1, (C,), dtype=jnp.float32)

    out = jax.block_until_ready(decoder_block(x, w0, b0, w1, b1))
    ref = jax.block_until_ready(_reference(x, w0, b0, w1, b1))

    assert out.shape == (N, C, H, W)
    # bf16 MXU operands with f32 accumulation -> loosen tolerance vs f32 ref.
    assert jnp.allclose(out, ref, atol=5e-2, rtol=5e-2), "mismatch vs reference"
    print("KERNEL_OK")
</pallas_src>

<mosaic_0001>
module attributes {stable_mosaic.version = 11 : i64} {
  func.func @_decoder_block_kernel(%arg0: i32, %arg1: memref<1x16x128xf32, #tpu.memory_space<vmem>>, %arg2: memref<3x128x128xbf16, #tpu.memory_space<vmem>>, %arg3: memref<1x128xf32, #tpu.memory_space<vmem>>, %arg4: memref<3x128x128xbf16, #tpu.memory_space<vmem>>, %arg5: memref<1x128xf32, #tpu.memory_space<vmem>>, %arg6: memref<1x16x128xf32, #tpu.memory_space<vmem>>, %arg7: memref<18x128xf32, #tpu.memory_space<vmem>>, %arg8: memref<18x128xf32, #tpu.memory_space<vmem>>) attributes {dimension_semantics = [#tpu.dimension_semantics<parallel>], iteration_bounds = array<i64: 2>, scalar_prefetch = 0 : i64, scratch_operands = 2 : i64, tpu.core_type = #tpu.core_type<tc>, window_params = [{transform_indices = @transform_0, window_bounds = array<i64: 1, 16, 128>}, {pipeline_mode = #tpu.pipeline_mode<synchronous>, transform_indices = @transform_1, window_bounds = array<i64: 3, 128, 128>}, {pipeline_mode = #tpu.pipeline_mode<synchronous>, transform_indices = @transform_2, window_bounds = array<i64: 1, 128>}, {pipeline_mode = #tpu.pipeline_mode<synchronous>, transform_indices = @transform_3, window_bounds = array<i64: 3, 128, 128>}, {pipeline_mode = #tpu.pipeline_mode<synchronous>, transform_indices = @transform_4, window_bounds = array<i64: 1, 128>}, {transform_indices = @transform_5, window_bounds = array<i64: 1, 16, 128>}]} {
    %c0 = arith.constant 0 : index
    %c0_0 = arith.constant 0 : index
    %c0_1 = arith.constant 0 : index
    %0 = vector.load %arg1[%c0, %c0_0, %c0_1] : memref<1x16x128xf32, #tpu.memory_space<vmem>>, vector<1x16x128xf32>
    %1 = vector.shape_cast %0 : vector<1x16x128xf32> to vector<16x128xf32>
    %cst = arith.constant 0.000000e+00 : f32
    %2 = vector.broadcast %cst : f32 to vector<1x128xf32>
    %c0_2 = arith.constant 0 : index
    %c0_3 = arith.constant 0 : index
    %3 = vector.load %arg7[%c0_2, %c0_3] : memref<18x128xf32, #tpu.memory_space<vmem>>, vector<1x128xf32>
    tpu.vector_store %arg7[%c0_2, %c0_3], %2 {strides = array<i32>} : memref<18x128xf32, #tpu.memory_space<vmem>>, vector<1x128xf32>,
    %c17 = arith.constant 17 : index
    %c0_4 = arith.constant 0 : index
    %4 = vector.load %arg7[%c17, %c0_4] : memref<18x128xf32, #tpu.memory_space<vmem>>, vector<1x128xf32>
    tpu.vector_store %arg7[%c17, %c0_4], %2 {strides = array<i32>} : memref<18x128xf32, #tpu.memory_space<vmem>>, vector<1x128xf32>,
    %c1 = arith.constant 1 : index
    %c0_5 = arith.constant 0 : index
    %5 = vector.load %arg7[%c1, %c0_5] : memref<18x128xf32, #tpu.memory_space<vmem>>, vector<16x128xf32>
    tpu.vector_store %arg7[%c1, %c0_5], %1 {strides = array<i32>} : memref<18x128xf32, #tpu.memory_space<vmem>>, vector<16x128xf32>,
    %cst_6 = arith.constant 0.000000e+00 : f32
    %6 = vector.broadcast %cst_6 : f32 to vector<16x128xf32>
    %c0_7 = arith.constant 0 : index
    %c0_8 = arith.constant 0 : index
    %7 = vector.load %arg7[%c0_7, %c0_8] : memref<18x128xf32, #tpu.memory_space<vmem>>, vector<16x128xf32>
    %8 = arith.truncf %7 : vector<16x128xf32> to vector<16x128xbf16>
    %c0_9 = arith.constant 0 : index
    %c0_10 = arith.constant 0 : index
    %c0_11 = arith.constant 0 : index
    %9 = vector.load %arg2[%c0_9, %c0_10, %c0_11] : memref<3x128x128xbf16, #tpu.memory_space<vmem>>, vector<1x128x128xbf16>
    %10 = vector.shape_cast %9 : vector<1x128x128xbf16> to vector<128x128xbf16>
    %cst_12 = arith.constant dense<0.000000e+00> : vector<16x128xf32>
    %11 = tpu.matmul %8, %10, %cst_12 {dimension_numbers = #tpu.dot_dimension_numbers<[1], [0], [0], [1], [0, 0, 1, 1], [], []>} : vector<16x128xbf16>, vector<128x128xbf16>, vector<16x128xf32> -> vector<16x128xf32>
    %12 = arith.addf %6, %11 : vector<16x128xf32>
    %c1_13 = arith.constant 1 : index
    %c0_14 = arith.constant 0 : index
    %13 = vector.load %arg7[%c1_13, %c0_14] : memref<18x128xf32, #tpu.memory_space<vmem>>, vector<16x128xf32>
    %14 = arith.truncf %13 : vector<16x128xf32> to vector<16x128xbf16>
    %c1_15 = arith.constant 1 : index
    %c0_16 = arith.constant 0 : index
    %c0_17 = arith.constant 0 : index
    %15 = vector.load %arg2[%c1_15, %c0_16, %c0_17] : memref<3x128x128xbf16, #tpu.memory_space<vmem>>, vector<1x128x128xbf16>
    %16 = vector.shape_cast %15 : vector<1x128x128xbf16> to vector<128x128xbf16>
    %cst_18 = arith.constant dense<0.000000e+00> : vector<16x128xf32>
    %17 = tpu.matmul %14, %16, %cst_18 {dimension_numbers = #tpu.dot_dimension_numbers<[1], [0], [0], [1], [0, 0, 1, 1], [], []>} : vector<16x128xbf16>, vector<128x128xbf16>, vector<16x128xf32> -> vector<16x128xf32>
    %18 = arith.addf %12, %17 : vector<16x128xf32>
    %c2 = arith.constant 2 : index
    %c0_19 = arith.constant 0 : index
    %19 = vector.load %arg7[%c2, %c0_19] : memref<18x128xf32, #tpu.memory_space<vmem>>, vector<16x128xf32>
    %20 = arith.truncf %19 : vector<16x128xf32> to vector<16x128xbf16>
    %c2_20 = arith.constant 2 : index
    %c0_21 = arith.constant 0 : index
    %c0_22 = arith.constant 0 : index
    %21 = vector.load %arg2[%c2_20, %c0_21, %c0_22] : memref<3x128x128xbf16, #tpu.memory_space<vmem>>, vector<1x128x128xbf16>
    %22 = vector.shape_cast %21 : vector<1x128x128xbf16> to vector<128x128xbf16>
    %cst_23 = arith.constant dense<0.000000e+00> : vector<16x128xf32>
    %23 = tpu.matmul %20, %22, %cst_23 {dimension_numbers = #tpu.dot_dimension_numbers<[1], [0], [0], [1], [0, 0, 1, 1], [], []>} : vector<16x128xbf16>, vector<128x128xbf16>, vector<16x128xf32> -> vector<16x128xf32>
    %24 = arith.addf %18, %23 : vector<16x128xf32>
    %c0_24 = arith.constant 0 : index
    %c0_25 = arith.constant 0 : index
    %25 = vector.load %arg3[%c0_24, %c0_25] : memref<1x128xf32, #tpu.memory_space<vmem>>, vector<1x128xf32>
    %26 = vector.broadcast %25 : vector<1x128xf32> to vector<16x128xf32>
    %27 = arith.addf %24, %26 : vector<16x128xf32>
    %cst_26 = arith.constant 0.000000e+00 : f32
    %28 = vector.broadcast %cst_26 : f32 to vector<16x128xf32>
    %29 = arith.maximumf %27, %28 : vector<16x128xf32>
    %c0_27 = arith.constant 0 : index
    %c0_28 = arith.constant 0 : index
    %30 = vector.load %arg8[%c0_27, %c0_28] : memref<18x128xf32, #tpu.memory_space<vmem>>, vector<1x128xf32>
    tpu.vector_store %arg8[%c0_27, %c0_28], %2 {strides = array<i32>} : memref<18x128xf32, #tpu.memory_space<vmem>>, vector<1x128xf32>,
    %c17_29 = arith.constant 17 : index
    %c0_30 = arith.constant 0 : index
    %31 = vector.load %arg8[%c17_29, %c0_30] : memref<18x128xf32, #tpu.memory_space<vmem>>, vector<1x128xf32>
    tpu.vector_store %arg8[%c17_29, %c0_30], %2 {strides = array<i32>} : memref<18x128xf32, #tpu.memory_space<vmem>>, vector<1x128xf32>,
    %c1_31 = arith.constant 1 : index
    %c0_32 = arith.constant 0 : index
    %32 = vector.load %arg8[%c1_31, %c0_32] : memref<18x128xf32, #tpu.memory_space<vmem>>, vector<16x128xf32>
    tpu.vector_store %arg8[%c1_31, %c0_32], %29 {strides = array<i32>} : memref<18x128xf32, #tpu.memory_space<vmem>>, vector<16x128xf32>,
    %cst_33 = arith.constant 0.000000e+00 : f32
    %33 = vector.broadcast %cst_33 : f32 to vector<16x128xf32>
    %c0_34 = arith.constant 0 : index
    %c0_35 = arith.constant 0 : index
    %34 = vector.load %arg8[%c0_34, %c0_35] : memref<18x128xf32, #tpu.memory_space<vmem>>, vector<16x128xf32>
    %35 = arith.truncf %34 : vector<16x128xf32> to vector<16x128xbf16>
    %c0_36 = arith.constant 0 : index
    %c0_37 = arith.constant 0 : index
    %c0_38 = arith.constant 0 : index
    %36 = vector.load %arg4[%c0_36, %c0_37, %c0_38] : memref<3x128x128xbf16, #tpu.memory_space<vmem>>, vector<1x128x128xbf16>
    %37 = vector.shape_cast %36 : vector<1x128x128xbf16> to vector<128x128xbf16>
    %cst_39 = arith.constant dense<0.000000e+00> : vector<16x128xf32>
    %38 = tpu.matmul %35, %37, %cst_39 {dimension_numbers = #tpu.dot_dimension_numbers<[1], [0], [0], [1], [0, 0, 1, 1], [], []>} : vector<16x128xbf16>, vector<128x128xbf16>, vector<16x128xf32> -> vector<16x128xf32>
    %39 = arith.addf %33, %38 : vector<16x128xf32>
    %c1_40 = arith.constant 1 : index
    %c0_41 = arith.constant 0 : index
    %40 = vector.load %arg8[%c1_40, %c0_41] : memref<18x128xf32, #tpu.memory_space<vmem>>, vector<16x128xf32>
    %41 = arith.truncf %40 : vector<16x128xf32> to vector<16x128xbf16>
    %c1_42 = arith.constant 1 : index
    %c0_43 = arith.constant 0 : index
    %c0_44 = arith.constant 0 : index
    %42 = vector.load %arg4[%c1_42, %c0_43, %c0_44] : memref<3x128x128xbf16, #tpu.memory_space<vmem>>, vector<1x128x128xbf16>
    %43 = vector.shape_cast %42 : vector<1x128x128xbf16> to vector<128x128xbf16>
    %cst_45 = arith.constant dense<0.000000e+00> : vector<16x128xf32>
    %44 = tpu.matmul %41, %43, %cst_45 {dimension_numbers = #tpu.dot_dimension_numbers<[1], [0], [0], [1], [0, 0, 1, 1], [], []>} : vector<16x128xbf16>, vector<128x128xbf16>, vector<16x128xf32> -> vector<16x128xf32>
    %45 = arith.addf %39, %44 : vector<16x128xf32>
    %c2_46 = arith.constant 2 : index
    %c0_47 = arith.constant 0 : index
    %46 = vector.load %arg8[%c2_46, %c0_47] : memref<18x128xf32, #tpu.memory_space<vmem>>, vector<16x128xf32>
    %47 = arith.truncf %46 : vector<16x128xf32> to vector<16x128xbf16>
    %c2_48 = arith.constant 2 : index
    %c0_49 = arith.constant 0 : index
    %c0_50 = arith.constant 0 : index
    %48 = vector.load %arg4[%c2_48, %c0_49, %c0_50] : memref<3x128x128xbf16, #tpu.memory_space<vmem>>, vector<1x128x128xbf16>
    %49 = vector.shape_cast %48 : vector<1x128x128xbf16> to vector<128x128xbf16>
    %cst_51 = arith.constant dense<0.000000e+00> : vector<16x128xf32>
    %50 = tpu.matmul %47, %49, %cst_51 {dimension_numbers = #tpu.dot_dimension_numbers<[1], [0], [0], [1], [0, 0, 1, 1], [], []>} : vector<16x128xbf16>, vector<128x128xbf16>, vector<16x128xf32> -> vector<16x128xf32>
    %51 = arith.addf %45, %50 : vector<16x128xf32>
    %c0_52 = arith.constant 0 : index
    %c0_53 = arith.constant 0 : index
    %52 = vector.load %arg5[%c0_52, %c0_53] : memref<1x128xf32, #tpu.memory_space<vmem>>, vector<1x128xf32>
    %53 = vector.broadcast %52 : vector<1x128xf32> to vector<16x128xf32>
    %54 = arith.addf %51, %53 : vector<16x128xf32>
    %55 = arith.addf %54, %1 : vector<16x128xf32>
    %c0_54 = arith.constant 0 : index
    %c0_55 = arith.constant 0 : index
    %c0_56 = arith.constant 0 : index
    %56 = vector.load %arg6[%c0_54, %c0_55, %c0_56] : memref<1x16x128xf32, #tpu.memory_space<vmem>>, vector<1x16x128xf32>
    %57 = vector.shape_cast %56 : vector<1x16x128xf32> to vector<16x128xf32>
    %58 = vector.shape_cast %55 : vector<16x128xf32> to vector<1x16x128xf32>
    tpu.vector_store %arg6[%c0_54, %c0_55, %c0_56], %58 {strides = array<i32>} : memref<1x16x128xf32, #tpu.memory_space<vmem>>, vector<1x16x128xf32>,
    return
  }
  func.func @transform_0(%arg0: i32) -> (i32, i32, i32) {
    %c0_i32 = arith.constant 0 : i32
    %c0_i32_0 = arith.constant 0 : i32
    %c0_i32_1 = arith.constant 0 : i32
    return %arg0, %c0_i32, %c0_i32_0 : i32, i32, i32
  }
  func.func @transform_1(%arg0: i32) -> (i32, i32, i32) {
    %c0_i32 = arith.constant 0 : i32
    %c0_i32_0 = arith.constant 0 : i32
    %c0_i32_1 = arith.constant 0 : i32
    %c0_i32_2 = arith.constant 0 : i32
    return %c0_i32, %c0_i32_0, %c0_i32_1 : i32, i32, i32
  }
  func.func @transform_2(%arg0: i32) -> (i32, i32) {
    %c0_i32 = arith.constant 0 : i32
    %c0_i32_0 = arith.constant 0 : i32
    %c0_i32_1 = arith.constant 0 : i32
    return %c0_i32, %c0_i32_0 : i32, i32
  }
  func.func @transform_3(%arg0: i32) -> (i32, i32, i32) {
    %c0_i32 = arith.constant 0 : i32
    %c0_i32_0 = arith.constant 0 : i32
    %c0_i32_1 = arith.constant 0 : i32
    %c0_i32_2 = arith.constant 0 : i32
    return %c0_i32, %c0_i32_0, %c0_i32_1 : i32, i32, i32
  }
  func.func @transform_4(%arg0: i32) -> (i32, i32) {
    %c0_i32 = arith.constant 0 : i32
    %c0_i32_0 = arith.constant 0 : i32
    %c0_i32_1 = arith.constant 0 : i32
    return %c0_i32, %c0_i32_0 : i32, i32
  }
  func.func @transform_5(%arg0: i32) -> (i32, i32, i32) {
    %c0_i32 = arith.constant 0 : i32
    %c0_i32_0 = arith.constant 0 : i32
    %c0_i32_1 = arith.constant 0 : i32
    return %arg0, %c0_i32, %c0_i32_0 : i32, i32, i32
  }
}

</mosaic_0001>

<bundles_post_ra>
// kernel: tpu_custom_call.1
= control target key start
LH: loop header
LB: loop body
LE: loop exit
PB: predicated region body
PF: predicated region fallthrough
CT: control target
= control target key end

     0   :  { %10 = vsyncpa [#allocation5], 0  ;;  %s1958_s0 = inlined_call_operand.hbm [shape: f32[2,16,128], index: 0, kind: input, shape index: {}]   ;;  %s1959_s1 = inlined_call_operand.hbm [shape: bf16[3,128,128], index: 1, kind: input, shape index: {}]   ;;  %s1960_s2 = inlined_call_operand.vmem [shape: f32[1,128], index: 2, kind: input, shape index: {}]   ;;  %s1961_s3 = inlined_call_operand.hbm [shape: bf16[3,128,128], index: 3, kind: input, shape index: {}]   ;;  %s1962_s4 = inlined_call_operand.vmem [shape: f32[1,128], index: 4, kind: input, shape index: {}]   ;;  %s1963_s5 = inlined_call_operand.hbm [shape: f32[2,16,128], index: 5, kind: output, shape index: {}]  }
   0x1   :  { %12 = vsyncpa [#allocation5 + $0x1], 0 }
   0x2   :  { %13 = vsyncpa [#allocation8], 0 }
   0x3   :  { %14 = vsyncpa [#allocation6], 0 }
   0x4   :  { %16 = vsyncpa [#allocation6 + $0x1], 0  ;;  %s1636_s18 = smov 0   ;;  %s1638_s19 = smov 0  }
   0x5   :  { %s1640_s20 = smov 0   ;;  %s1642_s21 = smov 0  }
   0x6 LB: > { %s1657_s22 = sadd.s32 4294967295, %s1592_s21   ;;  %s1069_s23 = sadd.s32 4294967294, %s1592_s21   ;;  %s1592_s21 = sphi %s1642_s21, %s1983_s21   ;;  %s1588_s20 = sphi %s1640_s20, %s1982_s20   ;;  %s1584_s19 = sphi %s1638_s19, %s1981_s19   ;;  %s1580_s18 = sphi %s1636_s18, %s1980_s18  }
   0x7   : > { %p42_p0 = scmp.ne.s32.totalorder %s1584_s19, %s1580_s18  ;;  %p1964_p1 = scmp.eq.s32.totalorder %s1657_s22, 0 }
   0x8   : > { %p156_p3 = scmp.eq.s32.totalorder %s1069_s23, 1  ;;  %p1070_p5 = scmp.ge.s32.totalorder %s1592_s21, 1 }
   0x9   : > { %p1666_p4 = por %p1964_p1, %p42_p0  ;;  %p163_p7 = scmp.lt.s32.totalorder %s1592_s21, 3 }
   0xa   : > { %p1671_p6 = por %p156_p3, %p42_p0  ;;  %s1594_s27 = smov [#allocation7]  }
   0xb   : > { %s1967_s24 = scalar_select %p1666_p4, 1, 0 }
   0xc   : > { %s1968_s25 = scalar_select %p1671_p6, 1, 0 }
   0xd   : > { %p1676_p8 = pnand %p1070_p5, %p163_p7  ;;  %s175_s28 = sshll.u32 %s1594_s27, 4  ;;  %s1680_s28 = int_to_ptr.vmem [resolvable:$true] %s175_s28 }
   0xe   : > { %s1595_s30 = smov [#allocation9]   ;;  %s1436_s9 = scalar_lea.hbm %s1959_s1, 3072 }
   0xf   : > { %p1325_p9 = pneg %p1676_p8  ;;  %s191_s6 = sshll.u32 %s1595_s30, 4  ;;  %s1691_s6 = int_to_ptr.vmem [resolvable:$true] %s191_s6 }
  0x10   : > { %p1437_p12 = scmp.ne.s32.totalorder %s1959_s1, %s1436_s9  ;;  %p1443_p5 = scmp.lt.u32.totalorder %s1436_s9, %s1959_s1 }
  0x11   : > { %p1687_p11 = pnand %p1325_p9, %p1964_p1 }
  0x13   : > { %p1438_p13 = pneg %p1687_p11 }
  0x15   : > { %p1439_p0 = pnand %p1438_p13, %p1437_p12 }
  0x17   : > { %p1440_p3 = pneg %p1439_p0 }
  0x19   : > { %p1445_p7 = pnand %p1443_p5, %p1440_p3 }
  0x1b   : > { %1448 = shalt.err (!%p1445_p7)
}
  0x1c   : > { %s1449_s14 = scalar_lea.vmem %s1680_s28, 3072  ;;  %p1457_p2 = scmp.lt.s32.totalorder %s1680_s28, %s1680_s28 }
  0x1d   : > { %p1450_p9 = scmp.ne.s32.totalorder %s1680_s28, %s1449_s14  ;;  %p1458_p12 = scmp.lt.s32.totalorder %s1449_s14, %s1449_s14 }
  0x1f   : > { %p1452_p10 = pnand %p1450_p9, %p1438_p13  ;;  %p1459_p0 = por %p1458_p12, %p1457_p2 }
  0x21   : > { %p1453_p1 = pneg %p1452_p10 }
  0x23   : > { %p1460_p6 = pnand %p1459_p0, %p1453_p1 }
  0x25   : > { %1463 = shalt.err (!%p1460_p6)
}
  0x26   : > { %s1596_s15 = smov 64   ;;  %s1597_s16 = smov 4  }
  0x27   : > { %1328 = dma.hbm_to_vmem [thread:$0]  (!%p1687_p11), %s1959_s1, 3072, %s1680_s28, [#allocation8], %s1596_s15, %s1596_s15, %s1597_s16  }
  0x28   : > { %s1464_s7 = scalar_lea.hbm %s1961_s3, 3072 }
  0x29   : > { %p1465_p2 = scmp.ne.s32.totalorder %s1961_s3, %s1464_s7  ;;  %p1471_p10 = scmp.lt.u32.totalorder %s1464_s7, %s1961_s3 }
  0x2b   : > { %p1467_p1 = pnand %p1465_p2, %p1438_p13 }
  0x2d   : > { %p1468_p6 = pneg %p1467_p1 }
  0x2f   : > { %p1473_p3 = pnand %p1471_p10, %p1468_p6 }
  0x31   : > { %1476 = shalt.err (!%p1473_p3)
}
  0x32   : > { %s1477_s28 = scalar_lea.vmem %s1691_s6, 3072  ;;  %p1485_p12 = scmp.lt.s32.totalorder %s1691_s6, %s1691_s6 }
  0x33   : > { %p1478_p5 = scmp.ne.s32.totalorder %s1691_s6, %s1477_s28  ;;  %p1486_p0 = scmp.lt.s32.totalorder %s1477_s28, %s1477_s28 }
  0x35   : > { %p1480_p7 = pnand %p1478_p5, %p1438_p13  ;;  %p1487_p2 = por %p1486_p0, %p1485_p12 }
  0x37   : > { %p1481_p9 = pneg %p1480_p7 }
  0x39   : > { %p1488_p1 = pnand %p1487_p2, %p1481_p9 }
  0x3b   : > { %1491 = shalt.err (!%p1488_p1)
}
  0x3c   : > { %1331 = dma.hbm_to_vmem [thread:$0]  (!%p1687_p11), %s1961_s3, 3072, %s1691_s6, [#allocation8], %s1596_s15, %s1596_s15, %s1597_s16  }
  0x3d   : > { %s1746_s14 = sadd.s32 1, %s1592_s21   ;;  %s29_s29 = sadd.s32 1, %s1588_s20 }
  0x3e   : > { %s26_s17 = ssub.s32 %s1592_s21, %s1746_s14  ;;  %p36_p13 = scmp.ne.s32.totalorder %s1588_s20, %s1584_s19 }
  0x3f   : > { %p27_p6 = scmp.eq.s32.totalorder %s26_s17, 0  ;;  %p37_p10 = scmp.eq.s32.totalorder %s1592_s21, 0 }
  0x40   : > { %p1971_p3 = scmp.eq.s32.totalorder %s1657_s22, 1  ;;  %p1342_p7 = scmp.lt.s32.totalorder %s1592_s21, 2 }
  0x41   : > { %s1762_s27 = scalar_select %p27_p6, %s1588_s20, %s29_s29  }
  0x42   : > { %p1756_p5 = por %p1971_p3, %p36_p13  ;;  %p38_p9 = por %p37_p10, %p36_p13 }
  0x43   : > { %s208_s30 = sand.u32 1, %s1588_s20   ;;  %s1137_s6 = sshll.u32 %s1592_s21, 8 }
  0x44   : > { %s1972_s23 = scalar_select %p1756_p5, 1, 0 }
  0x45   : > { %s1074_s7 = sshll.u32 %s208_s30, 4  ;;  %s1769_s8 = scalar_lea.hbm %s1958_s0, %s1137_s6 }
  0x46   : > { %s212_s9 = scalar_lea.vmem [#allocation4], %s1074_s7  ;;  %p1773_p11 = pnand %p1342_p7, %p38_p9 }
  0x47   : > { %s219_s10 = sshll.u32 %s212_s9, 4  ;;  %s1777_s28 = scalar_lea.sflag [#allocation5], %s208_s30  ;;  %s1771_s10 = int_to_ptr.vmem [resolvable:$true] %s219_s10 }
  0x48   : > { %s1492_s12 = scalar_lea.hbm %s1769_s8, 256  ;;  %p1494_p0 = pneg %p1773_p11 }
  0x49   : > { %p1493_p12 = scmp.ne.s32.totalorder %s1769_s8, %s1492_s12  ;;  %s1497_s17 = scalar_lea.hbm %s1958_s0, 512 }
  0x4a   : > { %p1498_p13 = scmp.lt.u32.totalorder %s1769_s8, %s1958_s0  ;;  %p1499_p6 = scmp.lt.u32.totalorder %s1497_s17, %s1492_s12 }
  0x4b   : > { %p1495_p2 = pnand %p1494_p0, %p1493_p12  ;;  %p1501_p3 = scmp.lt.u32.totalorder %s1492_s12, %s1769_s8 }
  0x4c   : > { %p1500_p10 = por %p1499_p6, %p1498_p13 }
  0x4d   : > { %p1496_p1 = pneg %p1495_p2 }
  0x4e   : > { %p1502_p7 = por %p1501_p3, %p1500_p10 }
  0x50   : > { %p1503_p9 = pnand %p1502_p7, %p1496_p1 }
  0x52   : > { %1506 = shalt.err (!%p1503_p9)
}
  0x53   : > { %s1507_s30 = scalar_lea.vmem %s1771_s10, 256  ;;  %s1598_s15 = smov [#allocation4]  }
  0x54   : > { %p1508_p12 = scmp.ne.s32.totalorder %s1771_s10, %s1507_s30  ;;  %s1512_s16 = sshll.u32 %s1598_s15, 4  ;;  %s1513_s16 = int_to_ptr.vmem [resolvable:$false] %s1512_s16 }
  0x55   : > { %s1514_s9 = scalar_lea.vmem %s1513_s16, 512  ;;  %p1515_p4 = scmp.lt.s32.totalorder %s1771_s10, %s1513_s16 }
  0x56   : > { %p1510_p2 = pnand %p1508_p12, %p1494_p0  ;;  %p1516_p13 = scmp.lt.s32.totalorder %s1514_s9, %s1507_s30 }
  0x58   : > { %p1511_p5 = pneg %p1510_p2  ;;  %p1517_p6 = por %p1516_p13, %p1515_p4 }
  0x5a   : > { %p1518_p10 = pnand %p1517_p6, %p1511_p5 }
  0x5c   : > { %1521 = shalt.err (!%p1518_p10)
}
  0x5d   : > { %s1599_s12 = smov 128   ;;  %s1600_s13 = smov 8  }
  0x5e   : > { %1335 = dma.hbm_to_vmem [thread:$0]  (!%p1773_p11), %s1769_s8, 256, %s1771_s10, %s1777_s28, %s1599_s12, %s1599_s12, %s1600_s13  }
  0x5f   : > { %231 = sbr.rel (%p1676_p8) target bundleno = 661 (0x295), region = 40  ;;  %s1808_s29 = sand.u32 (!%p1676_p8), 1, %s1584_s19  }
  0x60   : > { %s1078_s17 = sshll.u32 (!%p1676_p8), %s1808_s29, 4  ;;  %s234_s7 = scalar_lea.sflag (!%p1676_p8), [#allocation5], %s1808_s29 }
  0x61   : > { %s1814_s6 = scalar_lea.vmem (!%p1676_p8), [#allocation4], %s1078_s17  ;;  %p1974_p4 = scmp.ne.s32.totalorder (!%p1676_p8), %s1967_s24, 0 }
  0x66   : > { %1567 = dma.done.wait (%p1974_p4), %s234_s7, 256  }
  0x67   : > { %1569 = vsyncadd (%p1974_p4), %s234_s7, 4294967040  ;;  %p1975_p5 = scmp.eq.s32.totalorder %s1657_s22, 0 }
  0x69   : > { %1571 = dma.done.wait (%p1975_p5), [#allocation8], 6144   ;;  %p1976_p8 = pmov %p1975_p5 }
  0x6a   : > { %v1601_v0 = vmov 0.0   ;;  %vm1602_vm0 = vmmov 0   ;;  %v1388_v1 = vld [vmem:[#allocation7 + $0x40] sm:$0xff]   ;;  %v1390_v3 = vld [vmem:[#allocation7 + $0x48] sm:$0xff]   ;;  %v1392_v5 = vld [vmem:[#allocation7 + $0x50] sm:$0xff]   ;;  %s271_s11 = scalar_lea.vmem [#allocation10], %s1078_s17 }
  0x6b   : > { %1573 = vsyncadd (%p1976_p8), [#allocation8], 4294961152  ;;  %1193 = vmatprep.subr.bf16.mxu0 %v1601_v0  ;;  %275 = vst [vmem:[#allocation2] sm:$0x1] %v1601_v0  ;;  %1213 = vmatprep.subr.bf16.mxu1 %v1601_v0  ;;  %v1389_v2 = vld [vmem:[#allocation7] sm:$0xff]   ;;  %v1391_v4 = vld [vmem:[#allocation7 + $0x8] sm:$0xff]  }
  0x6c   : > { %276 = vst [vmem:[#allocation2 + $0x11] sm:$0x1] %v1601_v0  ;;  %618 = vst [vmem:[#allocation3] sm:$0x1] %v1601_v0  ;;  %1209 = vmatprep.mubr.msk.bf16.mxu0 %vm1602_vm0, %v1601_v0  ;;  %1229 = vmatprep.mubr.msk.bf16.mxu1 %vm1602_vm0, %v1601_v0  ;;  %v1393_v6 = vld [vmem:[#allocation7 + $0x10] sm:$0xff]   ;;  %v1394_v7 = vld [vmem:[#allocation7 + $0x58] sm:$0xff]  }
  0x6d   : > { %619 = vst [vmem:[#allocation3 + $0x11] sm:$0x1] %v1601_v0  ;;  %1194 = vmatpush3.bf16.msra.mxu0 %v1388_v1  ;;  %1214 = vmatpush3.bf16.msra.mxu1 %v1389_v2  ;;  %v1395_v8 = vld [vmem:[#allocation7 + $0x18] sm:$0xff]   ;;  %v1396_v9 = vld [vmem:[#allocation7 + $0x60] sm:$0xff]   ;;  %v1398_v13 = vld [vmem:[#allocation7 + $0x68] sm:$0xff]   ;;  %s977_s28 = sshll.u32 %s271_s11, 4  ;;  %s1908_s28 = int_to_ptr.vmem [resolvable:$true] %s977_s28 }
  0x6e   : > { %1195 = vmatprep.subr.bf16.mxu0 %v1601_v0  ;;  %1215 = vmatprep.subr.bf16.mxu1 %v1601_v0  ;;  %v1397_v10 = vld [vmem:[#allocation7 + $0x20] sm:$0xff]   ;;  %v1846_v12 = vld [vmem:[%s1814_s6 + $0x8] sm:$0xff]  ;;  %v1400_v15 = vld [vmem:[#allocation7 + $0x70] sm:$0xff]   ;;  %s1138_s30 = sshll.u32 %s1657_s22, 8  ;;  %s964_s12 = scalar_lea.sflag [#allocation6], %s1808_s29 }
  0x6f   : > { %v1843_v11 = vld [vmem:[%s1814_s6] sm:$0xff]  ;;  %278 = vst [vmem:[#allocation2 + $0x9] sm:$0xff] %v1846_v12  ;;  %v1399_v14 = vld [vmem:[#allocation7 + $0x28] sm:$0xff]   ;;  %v1402_v17 = vld [vmem:[#allocation7 + $0x78] sm:$0xff]   ;;  %s1913_s9 = scalar_lea.hbm %s1963_s5, %s1138_s30  ;;  %s1522_s13 = scalar_lea.vmem %s1908_s28, 256 }
  0x70   : > { %277 = vst [vmem:[#allocation2 + $0x1] sm:$0xff] %v1843_v11  ;;  %v1401_v16 = vld [vmem:[#allocation7 + $0x30] sm:$0xff]   ;;  %v1403_v18 = vld [vmem:[#allocation7 + $0x38] sm:$0xff]   ;;  %v1404_v21 = vld [vmem:[#allocation7 + $0x80] sm:$0xff]   ;;  %v300_v22 = vpack.c.bf16 %v1846_v12, %v1843_v11  ;;  %p1523_p11 = scmp.ne.s32.totalorder %s1908_s28, %s1522_s13  ;;  %p1977_p0 = scmp.ne.s32.totalorder %s1972_s23, 0 }
  0x71   : > { %1196 = vmatpush3.bf16.msra.mxu0 %v1390_v3  ;;  %1216 = vmatpush3.bf16.msra.mxu1 %v1391_v4  ;;  %v1405_v24 = vld [vmem:[#allocation7 + $0x88] sm:$0xff]   ;;  %v1406_v25 = vld [vmem:[#allocation7 + $0x90] sm:$0xff]   ;;  %v1407_v26 = vld [vmem:[#allocation7 + $0x98] sm:$0xff]   ;;  %s1603_s22 = smov [#allocation10]  }
  0x72   : > { %1197 = vmatprep.subr.bf16.mxu0 %v1601_v0  ;;  %1217 = vmatprep.subr.bf16.mxu1 %v1601_v0  ;;  %v1408_v27 = vld [vmem:[#allocation7 + $0xa0] sm:$0xff]   ;;  %v1409_v28 = vld [vmem:[#allocation7 + $0xa8] sm:$0xff]   ;;  %v1410_v29 = vld [vmem:[#allocation7 + $0xb0] sm:$0xff]   ;;  %p1524_p1 = pnand %p1523_p11, %p1977_p0  ;;  %s1526_s17 = sshll.u32 %s1603_s22, 4  ;;  %s1527_s17 = int_to_ptr.vmem [resolvable:$false] %s1526_s17 }
  0x73   : > { %v1411_v30 = vld [vmem:[#allocation7 + $0xb8] sm:$0xff]   ;;  %v1412_v34 = vld [vmem:[#allocation9 + $0x40] sm:$0xff]   ;;  %v1414_v36 = vld [vmem:[#allocation9 + $0x48] sm:$0xff]   ;;  %s1528_s7 = scalar_lea.vmem %s1527_s17, 512  ;;  %p1529_p7 = scmp.lt.s32.totalorder %s1908_s28, %s1527_s17 }
  0x74   : > { %v1413_v35 = vld [vmem:[#allocation9] sm:$0xff]   ;;  %v1415_v37 = vld [vmem:[#allocation9 + $0x8] sm:$0xff]   ;;  %v1416_v38 = vld [vmem:[#allocation9 + $0x50] sm:$0xff]   ;;  %p1525_p3 = pneg %p1524_p1  ;;  %p1530_p9 = scmp.lt.s32.totalorder %s1528_s7, %s1522_s13 }
  0x75   : > { %1198 = vmatpush3.bf16.msra.mxu0 %v1392_v5  ;;  %1218 = vmatpush3.bf16.msra.mxu1 %v1393_v6  ;;  %v1417_v39 = vld [vmem:[#allocation9 + $0x10] sm:$0xff]   ;;  %v1418_v40 = vld [vmem:[#allocation9 + $0x58] sm:$0xff]   ;;  %v1420_v41 = vld [vmem:[#allocation9 + $0x60] sm:$0xff]  }
  0x76   : > { %1199 = vmatprep.subr.bf16.mxu0 %v1601_v0  ;;  %1219 = vmatprep.subr.bf16.mxu1 %v1601_v0  ;;  %v497_v32 = vld [vmem:[#allocation2 + $0xa] sm:$0xff]  ;;  %v1422_v42 = vld [vmem:[#allocation9 + $0x68] sm:$0xff]   ;;  %v1424_v44 = vld [vmem:[#allocation9 + $0x70] sm:$0xff]   ;;  %p1531_p12 = por %p1530_p9, %p1529_p7 }
  0x77   : > { %v279_v19 = vld [vmem:[#allocation2] sm:$0xff]  ;;  %v280_v20 = vld [vmem:[#allocation2 + $0x8] sm:$0xff]  ;;  %v1421_v45 = vld [vmem:[#allocation9 + $0x20] sm:$0xff]  }
  0x78   : > { %v281_v23 = vpack.c.bf16 %v280_v20, %v279_v19  ;;  %v496_v31 = vld [vmem:[#allocation2 + $0x2] sm:$0xff]  ;;  %v1423_v47 = vld [vmem:[#allocation9 + $0x28] sm:$0xff]   ;;  %v1106_v61 = vld [vmem:[%s1960_s2] ss:$0 sm:$0xff]  ;;  %p1532_p2 = pnand %p1531_p12, %p1525_p3 }
  0x79   : > { %1200 = vmatpush3.bf16.msra.mxu0 %v1394_v7  ;;  %1220 = vmatpush3.bf16.msra.mxu1 %v1395_v8  ;;  %v498_v33 = vpack.c.bf16 %v497_v32, %v496_v31  ;;  %v1419_v43 = vld [vmem:[#allocation9 + $0x18] sm:$0xff]   ;;  %v1425_v48 = vld [vmem:[#allocation9 + $0x30] sm:$0xff]   ;;  %v1428_v8 = vld [vmem:[#allocation9 + $0x80] sm:$0xff]  }
  0x7a   : > { %1201 = vmatprep.subr.bf16.mxu0 %v1601_v0  ;;  %1221 = vmatprep.subr.bf16.mxu1 %v1601_v0  ;;  %v1426_v46 = vld [vmem:[#allocation9 + $0x78] sm:$0xff]   ;;  %v1433_v19 = vld [vmem:[#allocation9 + $0xa8] sm:$0xff]   ;;  %v1434_v20 = vld [vmem:[#allocation9 + $0xb0] sm:$0xff]  }
  0x7b   : > { %v1427_v49 = vld [vmem:[#allocation9 + $0x38] sm:$0xff]  }
  0x7d   : > { %1202 = vmatpush3.bf16.msra.mxu0 %v1396_v9  ;;  %1222 = vmatpush3.bf16.msra.mxu1 %v1397_v10  ;;  %v1429_v10 = vld [vmem:[#allocation9 + $0x88] sm:$0xff]  }
  0x7e   : > { %1203 = vmatprep.subr.bf16.mxu0 %v1601_v0  ;;  %1223 = vmatprep.subr.bf16.mxu1 %v1601_v0 }
  0x81   : > { %1204 = vmatpush3.bf16.msra.mxu0 %v1398_v13  ;;  %1224 = vmatpush3.bf16.msra.mxu1 %v1399_v14 }
  0x82   : > { %1205 = vmatprep.subr.bf16.mxu0 %v1601_v0  ;;  %1225 = vmatprep.subr.bf16.mxu1 %v1601_v0 }
  0x85   : > { %1206 = vmatpush3.bf16.msra.mxu0 %v1400_v15  ;;  %1226 = vmatpush3.bf16.msra.mxu1 %v1401_v16  ;;  %v1430_v15 = vld [vmem:[#allocation9 + $0x90] sm:$0xff]  }
  0x86   : > { %1207 = vmatprep.subr.bf16.mxu0 %v1601_v0  ;;  %1227 = vmatprep.subr.bf16.mxu1 %v1601_v0 }
  0x89   : > { %1208 = vmatpush3.bf16.msra.mxu0 %v1402_v17  ;;  %1228 = vmatpush3.bf16.msra.mxu1 %v1403_v18  ;;  %v1431_v17 = vld [vmem:[#allocation9 + $0x98] sm:$0xff]   ;;  %v1432_v18 = vld [vmem:[#allocation9 + $0xa0] sm:$0xff]  }
  0x8a   : > { %1233 = vmatprep.subr.bf16.mxu0 %v1601_v0  ;;  %1253 = vmatprep.subr.bf16.mxu1 %v1601_v0 }
  0x8c   : > { %1210 = vmatmul.mubr.bf16.vlgmr.msra.gmra.mrb[0].mxu0 %v300_v22  ;;  %1230 = vmatmul.mubr.bf16.vlgmr.msra.gmra.mrb[0].mxu1 %v281_v23 }
  0x8d   : > { %1234 = vmatpush3.bf16.msra.mxu0 %v1404_v21  ;;  %1249 = vmatprep.mubr.msk.bf16.mxu0 %vm1602_vm0, %v1601_v0  ;;  %v1435_v21 = vld [vmem:[#allocation9 + $0xb8] sm:$0xff]  }
  0x8e   : > { %1235 = vmatprep.subr.bf16.mxu0 %v1601_v0  ;;  %1269 = vmatprep.mubr.msk.bf16.mxu1 %vm1602_vm0, %v1601_v0 }
  0x8f   : > { %1254 = vmatpush3.bf16.msra.mxu1 %v1412_v34 }
  0x90   : > { %1255 = vmatprep.subr.bf16.mxu1 %v1601_v0 }
  0x91   : > { %1236 = vmatpush3.bf16.msra.mxu0 %v1405_v24 }
  0x92   : > { %1237 = vmatprep.subr.bf16.mxu0 %v1601_v0 }
  0x93   : > { %1256 = vmatpush3.bf16.msra.mxu1 %v1414_v36 }
  0x94   : > { %1257 = vmatprep.subr.bf16.mxu1 %v1601_v0 }
  0x95   : > { %1238 = vmatpush3.bf16.msra.mxu0 %v1406_v25 }
  0x96   : > { %1239 = vmatprep.subr.bf16.mxu0 %v1601_v0 }
  0x97   : > { %1258 = vmatpush3.bf16.msra.mxu1 %v1416_v38 }
  0x98   : > { %1259 = vmatprep.subr.bf16.mxu1 %v1601_v0 }
  0x99   : > { %1240 = vmatpush3.bf16.msra.mxu0 %v1407_v26 }
  0x9a   : > { %1241 = vmatprep.subr.bf16.mxu0 %v1601_v0 }
  0x9b   : > { %1260 = vmatpush3.bf16.msra.mxu1 %v1418_v40 }
  0x9c   : > { %1261 = vmatprep.subr.bf16.mxu1 %v1601_v0 }
  0x9d   : > { %1242 = vmatpush3.bf16.msra.mxu0 %v1408_v27 }
  0x9e   : > { %1243 = vmatprep.subr.bf16.mxu0 %v1601_v0 }
  0x9f   : > { %1262 = vmatpush3.bf16.msra.mxu1 %v1420_v41 }
  0xa0   : > { %1263 = vmatprep.subr.bf16.mxu1 %v1601_v0 }
  0xa1   : > { %1244 = vmatpush3.bf16.msra.mxu0 %v1409_v28 }
  0xa2   : > { %1245 = vmatprep.subr.bf16.mxu0 %v1601_v0 }
  0xa3   : > { %1264 = vmatpush3.bf16.msra.mxu1 %v1422_v42 }
  0xa4   : > { %1265 = vmatprep.subr.bf16.mxu1 %v1601_v0 }
  0xa5   : > { %1246 = vmatpush3.bf16.msra.mxu0 %v1410_v29 }
  0xa6   : > { %1247 = vmatprep.subr.bf16.mxu0 %v1601_v0 }
  0xa7   : > { %1266 = vmatpush3.bf16.msra.mxu1 %v1424_v44 }
  0xa8   : > { %1267 = vmatprep.subr.bf16.mxu1 %v1601_v0 }
  0xa9   : > { %1248 = vmatpush3.bf16.msra.mxu0 %v1411_v30 }
  0xaa   : > { %1273 = vmatprep.subr.bf16.mxu0 %v1601_v0 }
  0xab   : > { %1268 = vmatpush3.bf16.msra.mxu1 %v1426_v46 }
  0xac   : > { %1250 = vmatmul.mubr.bf16.vlgmr.msra.gmra.mrb[4].mxu0 %v498_v33  ;;  %1293 = vmatprep.subr.bf16.mxu1 %v1601_v0 }
  0xad   : > { %1289 = vmatprep.mubr.msk.bf16.mxu0 %vm1602_vm0, %v1601_v0  ;;  %1274 = vmatpush3.bf16.msra.mxu0 %v1413_v35 }
  0xae   : > { %1275 = vmatprep.subr.bf16.mxu0 %v1601_v0 }
  0xb1   : > { %1276 = vmatpush3.bf16.msra.mxu0 %v1415_v37 }
  0xb2   : > { %1277 = vmatprep.subr.bf16.mxu0 %v1601_v0 }
  0xb5   : > { %1278 = vmatpush3.bf16.msra.mxu0 %v1417_v39 }
  0xb6   : > { %1279 = vmatprep.subr.bf16.mxu0 %v1601_v0 }
  0xb9   : > { %1280 = vmatpush3.bf16.msra.mxu0 %v1419_v43 }
  0xba   : > { %1281 = vmatprep.subr.bf16.mxu0 %v1601_v0 }
  0xbd   : > { %1282 = vmatpush3.bf16.msra.mxu0 %v1421_v45 }
  0xbe   : > { %1283 = vmatprep.subr.bf16.mxu0 %v1601_v0 }
  0xc1   : > { %1284 = vmatpush3.bf16.msra.mxu0 %v1423_v47 }
  0xc2   : > { %1285 = vmatprep.subr.bf16.mxu0 %v1601_v0 }
  0xc5   : > { %1286 = vmatpush3.bf16.msra.mxu0 %v1425_v48 }
  0xc6   : > { %1287 = vmatprep.subr.bf16.mxu0 %v1601_v0 }
  0xc9   : > { %1288 = vmatpush3.bf16.msra.mxu0 %v1427_v49 }
 0x15f   : > { %v400_v50 = vpop.f32.mrb[0].mxu0  ;;  %v489_v51 = vpop.f32.mrb[0].mxu1 }
 0x160   : > { %v1211_v52 = vpop.f32.mrb[1].mxu0  ;;  %v490_v53 = vadd.f32 %v489_v51, %v400_v50  ;;  %v1231_v54 = vpop.f32.mrb[1].mxu1 }
 0x161   : > { %v403_v55 = vpop.f32.mrb[2].mxu0  ;;  %v492_v56 = vpop.f32.mrb[2].mxu1 }
 0x162   : > { %v1212_v57 = vpop.f32.mrb[3].mxu0  ;;  %v493_v58 = vadd.f32 %v492_v56, %v403_v55  ;;  %v1232_v59 = vpop.f32.mrb[3].mxu1 }
 0x17f   : > { %v598_v60 = vpop.f32.mrb[4].mxu0 }
 0x180   : > { %v605_v62 = vadd.f32 %v598_v60, %v490_v53  ;;  %v1251_v63 = vpop.f32.mrb[5].mxu0 }
 0x181   : > { %v601_v1 = vpop.f32.mrb[6].mxu0 }
 0x182   : > { %v614_v2 = vadd.f32 %v1106_v61, %v605_v62  ;;  %v606_v3 = vadd.f32 %v601_v1, %v493_v58  ;;  %v1252_v4 = vpop.f32.mrb[7].mxu0 }
 0x184   : > { %v616_v5 = vmax.f32 %v614_v2, 0.0  ;;  %v615_v6 = vadd.f32 %v1106_v61, %v606_v3 }
 0x186   : > { %620 = vst [vmem:[#allocation3 + $0x1] sm:$0xff] %v616_v5  ;;  %v617_v7 = vmax.f32 %v615_v6, 0.0 }
 0x188   : > { %621 = vst [vmem:[#allocation3 + $0x9] sm:$0xff] %v617_v7  ;;  %v643_v9 = vpack.c.bf16 %v617_v7, %v616_v5 }
 0x18a   : > { %1270 = vmatmul.mubr.bf16.vlgmr.msra.gmra.mrb[4].mxu1 %v643_v9 }
 0x18b   : > { %1294 = vmatpush3.bf16.msra.mxu1 %v1428_v8  ;;  %1309 = vmatprep.mubr.msk.bf16.mxu1 %vm1602_vm0, %v1601_v0 }
 0x18c   : > { %1295 = vmatprep.subr.bf16.mxu1 %v1601_v0 }
 0x18d   : > { %v622_v13 = vld [vmem:[#allocation3] sm:$0xff] }
 0x18f   : > { %v623_v14 = vld [vmem:[#allocation3 + $0x8] sm:$0xff]  ;;  %1296 = vmatpush3.bf16.msra.mxu1 %v1429_v10 }
 0x190   : > { %v624_v16 = vpack.c.bf16 %v623_v14, %v622_v13  ;;  %1297 = vmatprep.subr.bf16.mxu1 %v1601_v0  ;;  %v839_v22 = vld [vmem:[#allocation3 + $0x2] sm:$0xff]  ;;  %v840_v23 = vld [vmem:[#allocation3 + $0xa] sm:$0xff] }
 0x191   : > { %v841_v24 = vpack.c.bf16 %v840_v23, %v839_v22 }
 0x192   : > { %1290 = vmatmul.mubr.bf16.vlgmr.msra.gmra.mrb[8].mxu0 %v624_v16 }
 0x193   : > { %1298 = vmatpush3.bf16.msra.mxu1 %v1430_v15 }
 0x194   : > { %1299 = vmatprep.subr.bf16.mxu1 %v1601_v0 }
 0x197   : > { %1300 = vmatpush3.bf16.msra.mxu1 %v1431_v17 }
 0x198   : > { %1301 = vmatprep.subr.bf16.mxu1 %v1601_v0 }
 0x19b   : > { %1302 = vmatpush3.bf16.msra.mxu1 %v1432_v18 }
 0x19c   : > { %1303 = vmatprep.subr.bf16.mxu1 %v1601_v0 }
 0x19f   : > { %1304 = vmatpush3.bf16.msra.mxu1 %v1433_v19 }
 0x1a0   : > { %1305 = vmatprep.subr.bf16.mxu1 %v1601_v0 }
 0x1a3   : > { %1306 = vmatpush3.bf16.msra.mxu1 %v1434_v20 }
 0x1a4   : > { %1307 = vmatprep.subr.bf16.mxu1 %v1601_v0  ;;  %v1131_v0 = vld [vmem:[%s1962_s4] ss:$0 sm:$0xff] }
 0x1a7   : > { %1308 = vmatpush3.bf16.msra.mxu1 %v1435_v21 }
 0x1aa   : > { %1310 = vmatmul.mubr.bf16.vlgmr.msra.gmra.mrb[8].mxu1 %v841_v24 }
 0x25d   : > { %v743_v25 = vpop.f32.mrb[4].mxu1 }
 0x25e   : > { %v1271_v26 = vpop.f32.mrb[5].mxu1 }
 0x25f   : > { %v746_v27 = vpop.f32.mrb[6].mxu1 }
 0x260   : > { %v1272_v28 = vpop.f32.mrb[7].mxu1 }
 0x265   : > { %v832_v29 = vpop.f32.mrb[8].mxu0 }
 0x266   : > { %v833_v30 = vadd.f32 %v832_v29, %v743_v25  ;;  %v1291_v31 = vpop.f32.mrb[9].mxu0 }
 0x267   : > { %v835_v32 = vpop.f32.mrb[10].mxu0 }
 0x268   : > { %v836_v33 = vadd.f32 %v835_v32, %v746_v27  ;;  %v1292_v34 = vpop.f32.mrb[11].mxu0 }
 0x27d   : > { %v941_v35 = vpop.f32.mrb[8].mxu1 }
 0x27e   : > { %v948_v36 = vadd.f32 %v941_v35, %v833_v30  ;;  %v1311_v37 = vpop.f32.mrb[9].mxu1 }
 0x27f   : > { %v944_v38 = vpop.f32.mrb[10].mxu1 }
 0x280   : > { %v957_v39 = vadd.f32 %v1131_v0, %v948_v36  ;;  %v949_v40 = vadd.f32 %v944_v38, %v836_v33  ;;  %v1312_v41 = vpop.f32.mrb[11].mxu1 }
 0x282   : > { %v959_v42 = vadd.f32 %v957_v39, %v1843_v11  ;;  %v958_v43 = vadd.f32 %v1131_v0, %v949_v40 }
 0x284   : > { %961 = vst [vmem:[%s271_s11] sm:$0xff] %v959_v42  ;;  %v960_v44 = vadd.f32 %v958_v43, %v1846_v12 }
 0x286   : > { %962 = vst [vmem:[%s271_s11 + $0x8] sm:$0xff] %v960_v44 }
 0x287   : > { %1535 = shalt.err (!%p1532_p2)
}
 0x288   : > { %s1536_s6 = scalar_lea.hbm %s1913_s9, 256  ;;  %s1540_s8 = scalar_lea.hbm %s1963_s5, 512 }
 0x289   : > { %p1537_p13 = scmp.ne.s32.totalorder %s1913_s9, %s1536_s6  ;;  %p1541_p4 = scmp.lt.u32.totalorder %s1913_s9, %s1963_s5 }
 0x28a   : > { %p1542_p5 = scmp.lt.u32.totalorder %s1540_s8, %s1536_s6  ;;  %p1544_p11 = scmp.lt.u32.totalorder %s1536_s6, %s1913_s9 }
 0x28b   : > { %p1538_p6 = pnand %p1537_p13, %p1977_p0 }
 0x28c   : > { %p1543_p8 = por %p1542_p5, %p1541_p4 }
 0x28d   : > { %p1539_p10 = pneg %p1538_p6 }
 0x28e   : > { %p1545_p1 = por %p1544_p11, %p1543_p8 }
 0x290   : > { %p1546_p3 = pnand %p1545_p1, %p1539_p10 }
 0x292   : > { %1549 = shalt.err (!%p1546_p3)
}
 0x293   : > { %s1604_s30 = smov 128   ;;  %s1605_s15 = smov 8  }
 0x294   : > { %1323 = dma.vmem_to_hbm [thread:$0]  (%p1977_p0), %s1908_s28, 256, %s1913_s9, %s964_s12, %s1604_s30, %s1604_s30, %s1605_s15  }
 0x295 PF: > { %s992_s16 = sand.u32 1, %s1580_s18   ;;  %p1978_p7 = scmp.ne.s32.totalorder %s1968_s25, 0 }
 0x296   : > { %p1979_p9 = scmp.ge.s32.totalorder %s1592_s21, 2  ;;  %s993_s13 = scalar_lea.sflag [#allocation6], %s992_s16 }
 0x298   : > { %p1337_p12 = pnand %p1979_p9, %p1978_p7 }
 0x29a   : > { %1575 = dma.done.wait (!%p1337_p12), %s993_s13, 256  }
 0x29b   : > { %1577 = vsyncadd (!%p1337_p12), %s993_s13, 4294967040  ;;  %p19_p2 = scmp.ge.s32.totalorder %s1746_s14, 4   ;;  %s1980_s18 = smov %s1584_s19 }
 0x29c   : > { %s1981_s19 = smov %s1588_s20  ;;  %s1982_s20 = smov %s1762_s27 }
 0x29d   : > { %s1983_s21 = smov %s1746_s14  ;;  %21 = sbr.rel (!%p19_p2) target bundleno = 6 (0x6), region = 97 }
 0x2a4   :  { %998 = vsyncpa [#allocation5], 1 }
 0x2a5   :  { %1000 = vsyncpa [#allocation5 + $0x1], 1 }
 0x2a6   :  { %1001 = vsyncpa [#allocation8], 1 }
 0x2a7   :  { %1002 = vsyncpa [#allocation6], 1 }
 0x2a8   :  { %1004 = vsyncpa [#allocation6 + $0x1], 1 }

</bundles_post_ra>
